<compile_context>
chip_gen: v5e
topology: v5e:2x2
jax: 0.10.0
libtpu: 0.0.40
codegen_flags: <defaults>
</compile_context>

<pallas_src>
import functools

import jax
import jax.numpy as jnp
from jax.experimental import pallas as pl
from jax.experimental.pallas import tpu as pltpu

# Tile targets (review: 256-wide M/N, 512-deep K; clamped / divisor-matched
# per layer so small shapes and non-512-multiples of K don't pad wastefully).
TM, TN, TK = 256, 256, 512


def _rup(x, m):
    return (x + m - 1) // m * m


def _pick_tile(dp, target, base):
    """Largest tile <= target that is a multiple of `base` and divides dp."""
    t = min(target, dp)
    t = (t // base) * base
    while t > base:
        if dp % t == 0:
            return t
        t -= base
    return base


# ----------------------------- Pallas kernels -----------------------------

def _mm_affine_kernel(x_ref, w_ref, sh_ref, o_ref, acc_ref, *, relu):
    @pl.when(pl.program_id(2) == 0)
    def _():
        acc_ref[...] = jnp.zeros_like(acc_ref)

    acc_ref[...] += jnp.dot(x_ref[...], w_ref[...],
                            preferred_element_type=jnp.float32)

    @pl.when(pl.program_id(2) == pl.num_programs(2) - 1)
    def _():
        r = acc_ref[...] + sh_ref[...]
        if relu:
            r = jnp.maximum(r, 0.0)
        o_ref[...] = r.astype(o_ref.dtype)


def _mm_affine_res_kernel(x_ref, w_ref, sh_ref, r_ref, o_ref, acc_ref, *, relu):
    @pl.when(pl.program_id(2) == 0)
    def _():
        acc_ref[...] = jnp.zeros_like(acc_ref)

    acc_ref[...] += jnp.dot(x_ref[...], w_ref[...],
                            preferred_element_type=jnp.float32)

    @pl.when(pl.program_id(2) == pl.num_programs(2) - 1)
    def _():
        r = acc_ref[...] + sh_ref[...] + r_ref[...].astype(jnp.float32)
        if relu:
            r = jnp.maximum(r, 0.0)
        o_ref[...] = r.astype(o_ref.dtype)


def _maxpool_kernel(x_ref, o_ref):
    acc = x_ref[0]
    for i in range(1, x_ref.shape[0]):
        acc = jnp.maximum(acc, x_ref[i])
    o_ref[...] = acc


# --------------------------- Pallas call wrappers ---------------------------

@functools.partial(jax.jit, static_argnames=("relu", "n_out"))
def matmul_affine(x, w, shift, residual=None, *, relu=True, n_out=None):
    """out = relu((x @ w) + shift [+ residual]).

    x: (M, K) float, cast to bf16.  w: (Kp, Np) bf16, pre-padded (BN scale
    already folded in).  shift: (1, Np) f32.  Output bf16 (M, n_out).
    """
    M, K = x.shape
    Kp, Np = w.shape
    Mp = _rup(M, 8)
    tm = _pick_tile(Mp, TM, 8)
    tk = _pick_tile(Kp, TK, 128)
    tn = _pick_tile(Np, TN, 128)

    xp = jnp.zeros((Mp, Kp), jnp.bfloat16).at[:M, :K].set(
        x.astype(jnp.bfloat16))

    in_specs = [
        pl.BlockSpec((tm, tk), lambda i, j, k: (i, k)),
        pl.BlockSpec((tk, tn), lambda i, j, k: (k, j)),
        pl.BlockSpec((1, tn), lambda i, j, k: (0, j)),
    ]
    args = [xp, w, shift]
    if residual is None:
        kernel = functools.partial(_mm_affine_kernel, relu=relu)
    else:
        rM, rN = residual.shape
        rp = jnp.zeros((Mp, Np), jnp.bfloat16).at[:rM, :rN].set(
            residual.astype(jnp.bfloat16))
        in_specs.append(pl.BlockSpec((tm, tn), lambda i, j, k: (i, j)))
        args.append(rp)
        kernel = functools.partial(_mm_affine_res_kernel, relu=relu)

    out = pl.pallas_call(
        kernel,
        out_shape=jax.ShapeDtypeStruct((Mp, Np), jnp.bfloat16),
        grid=(Mp // tm, Np // tn, Kp // tk),
        in_specs=in_specs,
        out_specs=pl.BlockSpec((tm, tn), lambda i, j, k: (i, j)),
        scratch_shapes=[pltpu.VMEM((tm, tn), jnp.float32)],
        compiler_params=pltpu.CompilerParams(
            dimension_semantics=("parallel", "parallel", "arbitrary")),
    )(*args)
    return out[:M, :n_out]


@jax.jit
def maxpool_3x3_s2(x):
    """PyTorch MaxPool2d(kernel_size=3, stride=2, padding=1) on NHWC (bf16)."""
    n, h, w, c = x.shape
    xb = x.astype(jnp.bfloat16)
    xp = jnp.pad(xb, ((0, 0), (1, 1), (1, 1), (0, 0)),
                 constant_values=-jnp.inf)
    ho = (h + 2 - 3) // 2 + 1
    wo = (w + 2 - 3) // 2 + 1
    m = n * ho * wo
    views = [xp[:, i:i + 2 * ho:2, j:j + 2 * wo:2, :].reshape(m, c)
             for i in range(3) for j in range(3)]
    stacked = jnp.stack(views, axis=0)  # (9, M, C)

    Mp = _rup(m, 8)
    tm = _pick_tile(Mp, 512, 8)
    Cp = _rup(c, 128)
    sp = jnp.full((9, Mp, Cp), -jnp.inf, jnp.bfloat16).at[:, :m, :c].set(
        stacked)

    out = pl.pallas_call(
        _maxpool_kernel,
        out_shape=jax.ShapeDtypeStruct((Mp, Cp), jnp.bfloat16),
        grid=(Mp // tm,),
        in_specs=[pl.BlockSpec((9, tm, Cp), lambda i: (0, i, 0))],
        out_specs=pl.BlockSpec((tm, Cp), lambda i: (i, 0)),
        compiler_params=pltpu.CompilerParams(
            dimension_semantics=("parallel",)),
    )(sp)
    return out[:m, :c].reshape(n, ho, wo, c)


# ------------------------------- conv helpers -------------------------------

def _im2col(x, kh, kw, stride, pad):
    """x: (N,H,W,C) bf16 -> (N,Ho,Wo,kh*kw*C), channel-fastest per tap."""
    # TODO(synk): implicit im2col (kh*kw grid axis selecting shifted windows
    # via index_map) not implemented; patches are materialized in bf16 instead.
    n, h, w, c = x.shape
    xp = jnp.pad(x, ((0, 0), (pad, pad), (pad, pad), (0, 0)))
    ho = (h + 2 * pad - kh) // stride + 1
    wo = (w + 2 * pad - kw) // stride + 1
    cols = []
    for i in range(kh):
        for j in range(kw):
            cols.append(xp[:, i:i + stride * ho:stride,
                           j:j + stride * wo:stride, :])
    return jnp.concatenate(cols, axis=-1), ho, wo


def conv_bn(x, wprep, *, stride, pad, relu, residual=None):
    """Conv2d (no bias) + folded eval-mode BatchNorm (+residual) (+ReLU)."""
    kh, kw, cout = wprep["kh"], wprep["kw"], wprep["cout"]
    cols, ho, wo = _im2col(x, kh, kw, stride, pad)
    n = x.shape[0]
    m = n * ho * wo
    xm = cols.reshape(m, kh * kw * x.shape[-1])
    resm = None if residual is None else residual.reshape(m, cout)
    out = matmul_affine(xm, wprep["w"], wprep["shift"], resm,
                        relu=relu, n_out=cout)
    return out.reshape(n, ho, wo, cout)


# ------------------------------ parameter init ------------------------------

def make_bn(key, c, eps=1e-5):
    k1, k2 = jax.random.split(key)
    gamma = 1.0 + 0.1 * jax.random.normal(k1, (c,), jnp.float32)
    beta = 0.1 * jax.random.normal(k2, (c,), jnp.float32)
    mean = jnp.zeros((c,), jnp.float32)   # running_mean (eval mode)
    var = jnp.ones((c,), jnp.float32)     # running_var  (eval mode)
    scale = gamma / jnp.sqrt(var + eps)
    shift = beta - mean * scale
    return scale, shift


def make_conv(key, cin, cout, k):
    fan_in = cin * k * k
    std = (2.0 / fan_in) ** 0.5
    # HWIO layout, matching the im2col (tap-major, channel-fastest) ordering.
    return std * jax.random.normal(key, (k, k, cin, cout), jnp.float32)


def prep_conv(w_hwio, scale, shift):
    """Fold BN scale into the weights, reshape to (K,N), cast bf16, pre-pad."""
    kh, kw, cin, cout = w_hwio.shape
    K, N = kh * kw * cin, cout
    Kp, Np = _rup(K, 128), _rup(N, 128)
    wm = (w_hwio.reshape(K, N) * scale[None, :]).astype(jnp.bfloat16)
    wp = jnp.zeros((Kp, Np), jnp.bfloat16).at[:K, :N].set(wm)
    shp = jnp.zeros((1, Np), jnp.float32).at[0, :N].set(shift)
    return {"w": wp, "shift": shp, "kh": kh, "kw": kw, "cout": cout}


def make_bottleneck(key, cin, width, stride):
    ks = jax.random.split(key, 8)
    p = {
        "conv1": prep_conv(make_conv(ks[0], cin, width, 1),
                           *make_bn(ks[1], width)),
        "conv2": prep_conv(make_conv(ks[2], width, width, 3),
                           *make_bn(ks[3], width)),
        "conv3": prep_conv(make_conv(ks[4], width, width * 4, 1),
                           *make_bn(ks[5], width * 4)),
        "stride": stride,
    }
    if stride != 1 or cin != width * 4:
        p["down"] = prep_conv(make_conv(ks[6], cin, width * 4, 1),
                              *make_bn(ks[7], width * 4))
    return p


def make_resnet101_params(key, num_channel=21, num_classes=2):
    keys = jax.random.split(key, 8)

    # first_conv: Conv2d(21->3, 3x3, pad=1, bias=True) + BatchNorm2d(3);
    # conv bias folded into the BN shift, BN scale folded into the weight.
    fw = make_conv(keys[0], num_channel, 3, 3)
    fb = 0.1 * jax.random.normal(keys[1], (3,), jnp.float32)
    fscale, fshift = make_bn(keys[2], 3)
    params = {
        "first_conv": prep_conv(fw, fscale, fshift + fscale * fb),
        "conv1": prep_conv(make_conv(keys[3], 3, 64, 7),
                           *make_bn(keys[4], 64)),
    }

    layer_cfg = ((64, 3, 1), (128, 4, 2), (256, 23, 2), (512, 3, 2))
    lkeys = jax.random.split(keys[5], 4)
    cin = 64
    layers = []
    for (width, nblocks, stride), lk in zip(layer_cfg, lkeys):
        bkeys = jax.random.split(lk, nblocks)
        blocks = []
        for bi in range(nblocks):
            s = stride if bi == 0 else 1
            blocks.append(make_bottleneck(bkeys[bi], cin, width, s))
            cin = width * 4
        layers.append(blocks)
    params["layers"] = layers

    fc_w = (1.0 / 2048.0) ** 0.5 * jax.random.normal(
        keys[6], (2048, num_classes), jnp.float32)
    fc_b = 0.1 * jax.random.normal(keys[7], (num_classes,), jnp.float32)
    params["fc"] = prep_conv(fc_w.reshape(1, 1, 2048, num_classes),
                             jnp.ones((num_classes,), jnp.float32), fc_b)
    return params


# --------------------------------- forward ---------------------------------

def bottleneck_forward(x, p):
    stride = p["stride"]
    if "down" in p:
        identity = conv_bn(x, p["down"], stride=stride, pad=0, relu=False)
    else:
        identity = x
    out = conv_bn(x, p["conv1"], stride=1, pad=0, relu=True)
    out = conv_bn(out, p["conv2"], stride=stride, pad=1, relu=True)
    # conv3 + bn3 + residual add + final relu fused in one Pallas call.
    out = conv_bn(out, p["conv3"], stride=1, pad=0, relu=True,
                  residual=identity)
    return out


def resnet101_forward(params, x_nchw):
    # layout: NCHW (PyTorch) -> NHWC internally, bf16 activations.
    x = jnp.transpose(x_nchw, (0, 2, 3, 1)).astype(jnp.bfloat16)

    # first_conv: conv(21->3) + BN (no relu in the spec)
    x = conv_bn(x, params["first_conv"], stride=1, pad=1, relu=False)

    # resnet stem: 7x7/2 conv + bn + relu + 3x3/2 maxpool
    x = conv_bn(x, params["conv1"], stride=2, pad=3, relu=True)
    x = maxpool_3x3_s2(x)

    # layer1..layer4 (bottleneck blocks [3, 4, 23, 3])
    for blocks in params["layers"]:
        for p in blocks:
            x = bottleneck_forward(x, p)

    # AdaptiveAvgPool2d((1,1)): tiny reduction, JAX glue in f32.
    x = jnp.mean(x.astype(jnp.float32), axis=(1, 2))  # (N, 2048)

    # fc: Linear(2048 -> 2) via the same tiled Pallas matmul kernel.
    fc = params["fc"]
    logits = matmul_affine(x, fc["w"], fc["shift"], relu=False,
                           n_out=fc["cout"])
    return logits.astype(jnp.float32)


if __name__ == "__main__":
    key = jax.random.PRNGKey(0)
    pkey, xkey = jax.random.split(key)
    params = make_resnet101_params(pkey, num_channel=21, num_classes=2)
    x = jax.random.normal(xkey, (2, 21, 16, 16), jnp.float32)  # NCHW
    out = resnet101_forward(params, x)
    out = jax.block_until_ready(out)
    assert out.shape == (2, 2) and out.dtype == jnp.float32
    print("KERNEL_OK")
</pallas_src>

<mosaic_0001>
module attributes {stable_mosaic.version = 11 : i64} {
  func.func @_mm_affine_kernel(%arg0: i32, %arg1: i32, %arg2: i32, %arg3: memref<256x256xbf16, #tpu.memory_space<vmem>>, %arg4: memref<256x128xbf16, #tpu.memory_space<vmem>>, %arg5: memref<1x128xf32, #tpu.memory_space<vmem>>, %arg6: memref<256x128xbf16, #tpu.memory_space<vmem>>, %arg7: memref<256x128xf32, #tpu.memory_space<vmem>>) attributes {dimension_semantics = [#tpu.dimension_semantics<parallel>, #tpu.dimension_semantics<parallel>, #tpu.dimension_semantics<arbitrary>], iteration_bounds = array<i64: 2, 1, 1>, scalar_prefetch = 0 : i64, scratch_operands = 1 : i64, tpu.core_type = #tpu.core_type<tc>, window_params = [{transform_indices = @transform_0, window_bounds = array<i64: 256, 256>}, {transform_indices = @transform_1, window_bounds = array<i64: 256, 128>}, {transform_indices = @transform_2, window_bounds = array<i64: 1, 128>}, {transform_indices = @transform_3, window_bounds = array<i64: 256, 128>}]} {
    %c0_i32 = arith.constant 0 : i32
    %0 = arith.cmpi eq, %arg2, %c0_i32 : i32
    %1 = arith.extui %0 : i1 to i32
    %c0_i32_0 = arith.constant 0 : i32
    %2 = arith.cmpi ne, %1, %c0_i32_0 : i32
    scf.if %2 {
      %cst_10 = arith.constant 0.000000e+00 : f32
      %12 = vector.broadcast %cst_10 : f32 to vector<256x128xf32>
      %c0_11 = arith.constant 0 : index
      %c0_12 = arith.constant 0 : index
      %13 = vector.load %arg7[%c0_11, %c0_12] : memref<256x128xf32, #tpu.memory_space<vmem>>, vector<256x128xf32>
      tpu.vector_store %arg7[%c0_11, %c0_12], %12 {strides = array<i32>} : memref<256x128xf32, #tpu.memory_space<vmem>>, vector<256x128xf32>,
    } else {
    }
    %c0 = arith.constant 0 : index
    %c0_1 = arith.constant 0 : index
    %3 = vector.load %arg7[%c0, %c0_1] : memref<256x128xf32, #tpu.memory_space<vmem>>, vector<256x128xf32>
    %c0_2 = arith.constant 0 : index
    %c0_3 = arith.constant 0 : index
    %4 = vector.load %arg3[%c0_2, %c0_3] : memref<256x256xbf16, #tpu.memory_space<vmem>>, vector<256x256xbf16>
    %c0_4 = arith.constant 0 : index
    %c0_5 = arith.constant 0 : index
    %5 = vector.load %arg4[%c0_4, %c0_5] : memref<256x128xbf16, #tpu.memory_space<vmem>>, vector<256x128xbf16>
    %cst = arith.constant dense<0.000000e+00> : vector<256x128xf32>
    %6 = tpu.matmul %4, %5, %cst {dimension_numbers = #tpu.dot_dimension_numbers<[1], [0], [0], [1], [0, 0, 1, 1], [], []>} : vector<256x256xbf16>, vector<256x128xbf16>, vector<256x128xf32> -> vector<256x128xf32>
    %7 = arith.addf %3, %6 : vector<256x128xf32>
    %c0_6 = arith.constant 0 : index
    %c0_7 = arith.constant 0 : index
    %8 = vector.load %arg7[%c0_6, %c0_7] : memref<256x128xf32, #tpu.memory_space<vmem>>, vector<256x128xf32>
    tpu.vector_store %arg7[%c0_6, %c0_7], %7 {strides = array<i32>} : memref<256x128xf32, #tpu.memory_space<vmem>>, vector<256x128xf32>,
    %c0_i32_8 = arith.constant 0 : i32
    %9 = arith.cmpi eq, %arg2, %c0_i32_8 : i32
    %10 = arith.extui %9 : i1 to i32
    %c0_i32_9 = arith.constant 0 : i32
    %11 = arith.cmpi ne, %10, %c0_i32_9 : i32
    scf.if %11 {
      %c0_10 = arith.constant 0 : index
      %c0_11 = arith.constant 0 : index
      %12 = vector.load %arg7[%c0_10, %c0_11] : memref<256x128xf32, #tpu.memory_space<vmem>>, vector<256x128xf32>
      %c0_12 = arith.constant 0 : index
      %c0_13 = arith.constant 0 : index
      %13 = vector.load %arg5[%c0_12, %c0_13] : memref<1x128xf32, #tpu.memory_space<vmem>>, vector<1x128xf32>
      %14 = vector.broadcast %13 : vector<1x128xf32> to vector<256x128xf32>
      %15 = arith.addf %12, %14 : vector<256x128xf32>
      %16 = arith.truncf %15 : vector<256x128xf32> to vector<256x128xbf16>
      %c0_14 = arith.constant 0 : index
      %c0_15 = arith.constant 0 : index
      %17 = vector.load %arg6[%c0_14, %c0_15] : memref<256x128xbf16, #tpu.memory_space<vmem>>, vector<256x128xbf16>
      tpu.vector_store %arg6[%c0_14, %c0_15], %16 {strides = array<i32>} : memref<256x128xbf16, #tpu.memory_space<vmem>>, vector<256x128xbf16>,
    } else {
    }
    return
  }
  func.func @transform_0(%arg0: i32, %arg1: i32, %arg2: i32) -> (i32, i32) {
    %c0_i32 = arith.constant 0 : i32
    return %arg0, %arg2 : i32, i32
  }
  func.func @transform_1(%arg0: i32, %arg1: i32, %arg2: i32) -> (i32, i32) {
    %c0_i32 = arith.constant 0 : i32
    return %arg2, %arg1 : i32, i32
  }
  func.func @transform_2(%arg0: i32, %arg1: i32, %arg2: i32) -> (i32, i32) {
    %c0_i32 = arith.constant 0 : i32
    %c0_i32_0 = arith.constant 0 : i32
    return %c0_i32, %arg1 : i32, i32
  }
  func.func @transform_3(%arg0: i32, %arg1: i32, %arg2: i32) -> (i32, i32) {
    %c0_i32 = arith.constant 0 : i32
    return %arg0, %arg1 : i32, i32
  }
}

</mosaic_0001>

<bundles_post_ra>
// kernel: matmul_affine.1
= control target key start
LH: loop header
LB: loop body
LE: loop exit
PB: predicated region body
PF: predicated region fallthrough
CT: control target
= control target key end

     0   :  { %s1581_s12 = smov 0   ;;  %s1583_s13 = smov 0   ;;  %s1790_s0 = inlined_call_operand.vmem [shape: bf16[512,256], index: 0, kind: input, shape index: {}]   ;;  %s1791_s1 = inlined_call_operand.vmem [shape: bf16[256,128], index: 1, kind: input, shape index: {}]   ;;  %s1792_s2 = inlined_call_operand.vmem [shape: f32[1,128], index: 2, kind: input, shape index: {}]   ;;  %s1793_s3 = inlined_call_operand.vmem [shape: bf16[512,128], index: 3, kind: output, shape index: {}]  }
   0x1   :  { %s1585_s14 = smov 0  }
   0x2 LB: > { %s32_s15 = sadd.s32 1, %s1555_s13  ;;  %p1152_p0 = scmp.ge.s32.totalorder %s1559_s14, 1  ;;  %s1559_s14 = sphi %s1585_s14, %s13_s14   ;;  %s1555_s13 = sphi %s1583_s13, %s1795_s13   ;;  %s1551_s12 = sphi %s1581_s12, %s1794_s12  }
   0x3   : > { %p34_p1 = scmp.ge.s32.totalorder %s32_s15, 2  ;;  %p191_p2 = scmp.lt.s32.totalorder %s1559_s14, 3 }
   0x5   : > { %s1797_s15 = smov (%p34_p1, %s32_s15), 0  ;;  %p192_p3 = pnand %p1152_p0, %p191_p2 }
   0x6   : > { %s1153_s28 = sshll.u32 (!%p192_p3), %s1551_s12, 5 }
   0x7   : > { %195 = sbr.rel (%p192_p3) target bundleno = 304 (0x130), region = 32  ;;  %p236_p4 = scmp.lt.s32.totalorder (!%p192_p3), %s1153_s28, 63 }
   0xc   : > { %v1392_v0 = vld [vmem:[%s1791_s1 + $0x38] sm:$0xff]  ;;  %v1391_v2 = vld [vmem:[%s1791_s1 + $0x30] sm:$0xff]  ;;  %v1390_v4 = vld [vmem:[%s1791_s1 + $0x28] sm:$0xff]  ;;  %s1799_s28 = smov (!%p236_p4, %s1153_s28), 63 }
   0xd   : > { %v1400_v1 = vld [vmem:[%s1791_s1 + $0x78] sm:$0xff]  ;;  %655 = vmatpush.bf16.msra.mxu0 %v1392_v0  ;;  %1496 = vmatpush.bf16.msra.mxu2 %v1392_v0  ;;  %v1399_v3 = vld [vmem:[%s1791_s1 + $0x70] sm:$0xff]  ;;  %v1398_v5 = vld [vmem:[%s1791_s1 + $0x68] sm:$0xff]  ;;  %s1352_s17 = sshll.u32 %s1799_s28, 3  ;;  %s1157_s5 = sshll.u32 %s1799_s28, 2 }
   0xe   : > { %744 = vmatpush.bf16.msra.mxu1 %v1400_v1  ;;  %1504 = vmatpush.bf16.msra.mxu3 %v1400_v1  ;;  %v1389_v6 = vld [vmem:[%s1791_s1 + $0x20] sm:$0xff]  ;;  %v1388_v8 = vld [vmem:[%s1791_s1 + $0x18] sm:$0xff]  ;;  %v1387_v10 = vld [vmem:[%s1791_s1 + $0x10] sm:$0xff]  ;;  %s1647_s22 = scalar_lea.vmem %s1790_s0, %s1352_s17  ;;  %s1733_s8 = scalar_lea.vmem %s1793_s3, %s1157_s5 }
   0xf   : > { %v1397_v7 = vld [vmem:[%s1791_s1 + $0x60] sm:$0xff]  ;;  %v1396_v9 = vld [vmem:[%s1791_s1 + $0x58] sm:$0xff]  ;;  %v1395_v11 = vld [vmem:[%s1791_s1 + $0x50] sm:$0xff] }
  0x10   : > { %v1386_v12 = vld [vmem:[%s1791_s1 + $0x8] sm:$0xff]  ;;  %v1385_v14 = vld [vmem:[%s1791_s1] sm:$0xff]  ;;  %v1168_v28 = vld [vmem:[%s1647_s22 + $0x10] sm:$0xf] }
  0x11   : > { %656 = vmatpush.bf16.msra.mxu0 %v1391_v2  ;;  %1497 = vmatpush.bf16.msra.mxu2 %v1391_v2  ;;  %v1394_v13 = vld [vmem:[%s1791_s1 + $0x48] sm:$0xff]  ;;  %v1393_v15 = vld [vmem:[%s1791_s1 + $0x40] sm:$0xff]  ;;  %v1356_v29 = vld [vmem:[%s1647_s22 + $0x14] sm:$0xf0] }
  0x12   : > { %745 = vmatpush.bf16.msra.mxu1 %v1399_v3  ;;  %1505 = vmatpush.bf16.msra.mxu3 %v1399_v3  ;;  %v1160_v16 = vld [vmem:[%s1647_s22] sm:$0xf]  ;;  %v1354_v17 = vld [vmem:[%s1647_s22 + $0x4] sm:$0xf0]  ;;  %v1353_v20 = vld [vmem:[%s1647_s22 + $0x4] sm:$0xf]  ;;  %v1169_v36 = vor.u32 %v1356_v29, %v1168_v28 }
  0x13   : > { %v1224_v18 = vld [vmem:[%s1647_s22 + $0x80] sm:$0xf]  ;;  %v1370_v19 = vld [vmem:[%s1647_s22 + $0x84] sm:$0xf0]  ;;  %v1162_v21 = vld [vmem:[%s1647_s22 + $0x8] sm:$0xf0]  ;;  %v1161_v24 = vor.u32 %v1354_v17, %v1160_v16 }
  0x14   : > { %v1369_v22 = vld [vmem:[%s1647_s22 + $0x84] sm:$0xf]  ;;  %v1226_v23 = vld [vmem:[%s1647_s22 + $0x88] sm:$0xf0]  ;;  %v1225_v25 = vor.u32 %v1370_v19, %v1224_v18  ;;  %v1165_v26 = vor.u32 %v1353_v20, %v1162_v21  ;;  %v1232_v30 = vld [vmem:[%s1647_s22 + $0x90] sm:$0xf] }
  0x15   : > { %657 = vmatpush.bf16.msra.mxu0 %v1390_v4  ;;  %1498 = vmatpush.bf16.msra.mxu2 %v1390_v4  ;;  %v1229_v27 = vor.u32 %v1369_v22, %v1226_v23  ;;  %v1372_v31 = vld [vmem:[%s1647_s22 + $0x94] sm:$0xf0]  ;;  %v1355_v32 = vld [vmem:[%s1647_s22 + $0x14] sm:$0xf]  ;;  %v1170_v33 = vld [vmem:[%s1647_s22 + $0x18] sm:$0xf0] }
  0x16   : > { %746 = vmatpush.bf16.msra.mxu1 %v1398_v5  ;;  %1506 = vmatpush.bf16.msra.mxu3 %v1398_v5  ;;  %v1371_v34 = vld [vmem:[%s1647_s22 + $0x94] sm:$0xf]  ;;  %v1234_v35 = vld [vmem:[%s1647_s22 + $0x98] sm:$0xf0]  ;;  %v1233_v37 = vor.u32 %v1372_v31, %v1232_v30  ;;  %v1173_v38 = vor.u32 %v1355_v32, %v1170_v33  ;;  %v1176_v40 = vld [vmem:[%s1647_s22 + $0x20] sm:$0xf] }
  0x17   : > { %v1237_v39 = vor.u32 %v1371_v34, %v1234_v35  ;;  %v1358_v41 = vld [vmem:[%s1647_s22 + $0x24] sm:$0xf0]  ;;  %v1240_v42 = vld [vmem:[%s1647_s22 + $0xa0] sm:$0xf]  ;;  %v1357_v44 = vld [vmem:[%s1647_s22 + $0x24] sm:$0xf] }
  0x18   : > { %v1374_v43 = vld [vmem:[%s1647_s22 + $0xa4] sm:$0xf0]  ;;  %v1178_v45 = vld [vmem:[%s1647_s22 + $0x28] sm:$0xf0]  ;;  %v1373_v46 = vld [vmem:[%s1647_s22 + $0xa4] sm:$0xf]  ;;  %v1177_v48 = vor.u32 %v1358_v41, %v1176_v40 }
  0x19   : > { %658 = vmatpush.bf16.msra.mxu0 %v1389_v6  ;;  %1499 = vmatpush.bf16.msra.mxu2 %v1389_v6  ;;  %v1242_v47 = vld [vmem:[%s1647_s22 + $0xa8] sm:$0xf0]  ;;  %v1241_v49 = vor.u32 %v1374_v43, %v1240_v42  ;;  %v1181_v50 = vor.u32 %v1357_v44, %v1178_v45  ;;  %v1184_v52 = vld [vmem:[%s1647_s22 + $0x30] sm:$0xf]  ;;  %v1360_v53 = vld [vmem:[%s1647_s22 + $0x34] sm:$0xf0] }
  0x1a   : > { %747 = vmatpush.bf16.msra.mxu1 %v1397_v7  ;;  %1507 = vmatpush.bf16.msra.mxu3 %v1397_v7  ;;  %v1245_v51 = vor.u32 %v1373_v46, %v1242_v47  ;;  %v1248_v54 = vld [vmem:[%s1647_s22 + $0xb0] sm:$0xf]  ;;  %v1376_v55 = vld [vmem:[%s1647_s22 + $0xb4] sm:$0xf0]  ;;  %v1359_v56 = vld [vmem:[%s1647_s22 + $0x34] sm:$0xf]  ;;  %v1185_v60 = vor.u32 %v1360_v53, %v1184_v52 }
  0x1b   : > { %v1186_v57 = vld [vmem:[%s1647_s22 + $0x38] sm:$0xf0]  ;;  %v1375_v58 = vld [vmem:[%s1647_s22 + $0xb4] sm:$0xf]  ;;  %v1249_v61 = vor.u32 %v1376_v55, %v1248_v54  ;;  %v1192_v0 = vld [vmem:[%s1647_s22 + $0x40] sm:$0xf] }
  0x1c   : > { %v1250_v59 = vld [vmem:[%s1647_s22 + $0xb8] sm:$0xf0]  ;;  %v1189_v62 = vor.u32 %v1359_v56, %v1186_v57  ;;  %v1362_v1 = vld [vmem:[%s1647_s22 + $0x44] sm:$0xf0]  ;;  %v1256_v2 = vld [vmem:[%s1647_s22 + $0xc0] sm:$0xf] }
  0x1d   : > { %659 = vmatpush.bf16.msra.mxu0 %v1388_v8  ;;  %1500 = vmatpush.bf16.msra.mxu2 %v1388_v8  ;;  %v1253_v63 = vor.u32 %v1375_v58, %v1250_v59  ;;  %v1378_v3 = vld [vmem:[%s1647_s22 + $0xc4] sm:$0xf0]  ;;  %v1361_v4 = vld [vmem:[%s1647_s22 + $0x44] sm:$0xf]  ;;  %v1194_v5 = vld [vmem:[%s1647_s22 + $0x48] sm:$0xf0]  ;;  %v1193_v8 = vor.u32 %v1362_v1, %v1192_v0 }
  0x1e   : > { %748 = vmatpush.bf16.msra.mxu1 %v1396_v9  ;;  %1508 = vmatpush.bf16.msra.mxu3 %v1396_v9  ;;  %v1377_v6 = vld [vmem:[%s1647_s22 + $0xc4] sm:$0xf]  ;;  %v1258_v7 = vld [vmem:[%s1647_s22 + $0xc8] sm:$0xf0]  ;;  %v1257_v9 = vor.u32 %v1378_v3, %v1256_v2  ;;  %v1363_v16 = vld [vmem:[%s1647_s22 + $0x54] sm:$0xf] }
  0x1f   : > { %v1202_v17 = vld [vmem:[%s1647_s22 + $0x58] sm:$0xf0]  ;;  %v1379_v18 = vld [vmem:[%s1647_s22 + $0xd4] sm:$0xf]  ;;  %v1365_v28 = vld [vmem:[%s1647_s22 + $0x64] sm:$0xf] }
  0x20   : > { %v1266_v19 = vld [vmem:[%s1647_s22 + $0xd8] sm:$0xf0]  ;;  %v1205_v22 = vor.u32 %v1363_v16, %v1202_v17  ;;  %v1210_v29 = vld [vmem:[%s1647_s22 + $0x68] sm:$0xf0]  ;;  %v1381_v30 = vld [vmem:[%s1647_s22 + $0xe4] sm:$0xf] }
  0x21   : > { %660 = vmatpush.bf16.msra.mxu0 %v1387_v10  ;;  %1501 = vmatpush.bf16.msra.mxu2 %v1387_v10  ;;  %v1197_v10 = vor.u32 %v1361_v4, %v1194_v5  ;;  %v1269_v23 = vor.u32 %v1379_v18, %v1266_v19  ;;  %v1274_v31 = vld [vmem:[%s1647_s22 + $0xe8] sm:$0xf0]  ;;  %v1213_v34 = vor.u32 %v1365_v28, %v1210_v29  ;;  %v1367_v40 = vld [vmem:[%s1647_s22 + $0x74] sm:$0xf]  ;;  %v1218_v41 = vld [vmem:[%s1647_s22 + $0x78] sm:$0xf0] }
  0x22   : > { %749 = vmatpush.bf16.msra.mxu1 %v1395_v11  ;;  %1509 = vmatpush.bf16.msra.mxu3 %v1395_v11  ;;  %v1261_v11 = vor.u32 %v1377_v6, %v1258_v7  ;;  %v1277_v35 = vor.u32 %v1381_v30, %v1274_v31  ;;  %v1383_v42 = vld [vmem:[%s1647_s22 + $0xf4] sm:$0xf]  ;;  %v1282_v43 = vld [vmem:[%s1647_s22 + $0xf8] sm:$0xf0]  ;;  %v1221_v46 = vor.u32 %v1367_v40, %v1218_v41  ;;  %v1725_v53 = vld [vmem:[%s1792_s2] ss:$0 sm:$0xff] }
  0x23   : > { %v1285_v47 = vor.u32 %v1383_v42, %v1282_v43 }
  0x25   : > { %661 = vmatpush.bf16.msra.mxu0 %v1386_v12  ;;  %1502 = vmatpush.bf16.msra.mxu2 %v1386_v12  ;;  %v1200_v12 = vld [vmem:[%s1647_s22 + $0x50] sm:$0xf] }
  0x26   : > { %750 = vmatpush.bf16.msra.mxu1 %v1394_v13  ;;  %1510 = vmatpush.bf16.msra.mxu3 %v1394_v13  ;;  %v1364_v13 = vld [vmem:[%s1647_s22 + $0x54] sm:$0xf0] }
  0x27   : > { %v1201_v20 = vor.u32 %v1364_v13, %v1200_v12 }
  0x29   : > { %662 = vmatpush.bf16.msra.mxu0 %v1385_v14  ;;  %1503 = vmatpush.bf16.msra.mxu2 %v1385_v14  ;;  %v1264_v14 = vld [vmem:[%s1647_s22 + $0xd0] sm:$0xf] }
  0x2a   : > { %751 = vmatpush.bf16.msra.mxu1 %v1393_v15  ;;  %1511 = vmatpush.bf16.msra.mxu3 %v1393_v15  ;;  %v1380_v15 = vld [vmem:[%s1647_s22 + $0xd4] sm:$0xf0] }
  0x2b   : > { %v1265_v21 = vor.u32 %v1380_v15, %v1264_v14 }
  0x2c   : > { %663 = vmatmul.bf16.vlgmr.msra.gmra.mxu0 %v1161_v24  ;;  %703 = vmatmul.bf16.vlgmr.msra.gmra.mxu2 %v1225_v25  ;;  %v1208_v24 = vld [vmem:[%s1647_s22 + $0x60] sm:$0xf]  ;;  %v1366_v25 = vld [vmem:[%s1647_s22 + $0x64] sm:$0xf0] }
  0x2d   : > { %752 = vmatmul.bf16.vlgmr.msra.gmra.mxu1 %v1165_v26  ;;  %792 = vmatmul.bf16.vlgmr.msra.gmra.mxu3 %v1229_v27  ;;  %v1272_v26 = vld [vmem:[%s1647_s22 + $0xe0] sm:$0xf]  ;;  %v1382_v27 = vld [vmem:[%s1647_s22 + $0xe4] sm:$0xf0]  ;;  %v1209_v32 = vor.u32 %v1366_v25, %v1208_v24 }
  0x2e   : > { %v1273_v33 = vor.u32 %v1382_v27, %v1272_v26 }
  0x3c   : > { %668 = vmatmul.bf16.gmra.mxu0 %v1169_v36  ;;  %708 = vmatmul.bf16.gmra.mxu2 %v1233_v37  ;;  %v1216_v36 = vld [vmem:[%s1647_s22 + $0x70] sm:$0xf]  ;;  %v1368_v37 = vld [vmem:[%s1647_s22 + $0x74] sm:$0xf0] }
  0x3d   : > { %757 = vmatmul.bf16.gmra.mxu1 %v1173_v38  ;;  %797 = vmatmul.bf16.gmra.mxu3 %v1237_v39  ;;  %v1280_v38 = vld [vmem:[%s1647_s22 + $0xf0] sm:$0xf]  ;;  %v1384_v39 = vld [vmem:[%s1647_s22 + $0xf4] sm:$0xf0]  ;;  %v1217_v44 = vor.u32 %v1368_v37, %v1216_v36 }
  0x3e   : > { %v1281_v45 = vor.u32 %v1384_v39, %v1280_v38 }
  0x4c   : > { %673 = vmatmul.bf16.gmra.mxu0 %v1177_v48  ;;  %713 = vmatmul.bf16.gmra.mxu2 %v1241_v49 }
  0x4d   : > { %762 = vmatmul.bf16.gmra.mxu1 %v1181_v50  ;;  %802 = vmatmul.bf16.gmra.mxu3 %v1245_v51 }
  0x5c   : > { %678 = vmatmul.bf16.gmra.mxu0 %v1185_v60  ;;  %718 = vmatmul.bf16.gmra.mxu2 %v1249_v61 }
  0x5d   : > { %767 = vmatmul.bf16.gmra.mxu1 %v1189_v62  ;;  %807 = vmatmul.bf16.gmra.mxu3 %v1253_v63 }
  0x6c   : > { %683 = vmatmul.bf16.gmra.mxu0 %v1193_v8  ;;  %723 = vmatmul.bf16.gmra.mxu2 %v1257_v9 }
  0x6d   : > { %772 = vmatmul.bf16.gmra.mxu1 %v1197_v10  ;;  %812 = vmatmul.bf16.gmra.mxu3 %v1261_v11 }
  0x7c   : > { %688 = vmatmul.bf16.gmra.mxu0 %v1201_v20  ;;  %728 = vmatmul.bf16.gmra.mxu2 %v1265_v21 }
  0x7d   : > { %777 = vmatmul.bf16.gmra.mxu1 %v1205_v22  ;;  %817 = vmatmul.bf16.gmra.mxu3 %v1269_v23 }
  0x8c   : > { %693 = vmatmul.bf16.gmra.mxu0 %v1209_v32  ;;  %733 = vmatmul.bf16.gmra.mxu2 %v1273_v33 }
  0x8d   : > { %782 = vmatmul.bf16.gmra.mxu1 %v1213_v34  ;;  %822 = vmatmul.bf16.gmra.mxu3 %v1277_v35 }
  0x9c   : > { %698 = vmatmul.bf16.gmra.mxu0 %v1217_v44  ;;  %738 = vmatmul.bf16.gmra.mxu2 %v1281_v45 }
  0x9d   : > { %787 = vmatmul.bf16.gmra.mxu1 %v1221_v46  ;;  %827 = vmatmul.bf16.gmra.mxu3 %v1285_v47 }
  0xa9   : > { %v664_v48 = vpop.f32.mrf.mxu0 }
  0xaa   : > { %v753_v49 = vpop.f32.mrf.mxu1 }
  0xab   : > { %v754_v52 = vadd.f32 %v753_v49, %v664_v48 }
  0xad   : > { %v936_v57 = vadd.f32 %v1725_v53, %v754_v52 }
  0xaf   : > { %v704_v50 = vpop.f32.mrf.mxu2 }
  0xb0   : > { %v793_v51 = vpop.f32.mrf.mxu3 }
  0xb1   : > { %v666_v54 = vpop.f32.mrf.mxu0  ;;  %v794_v59 = vadd.f32 %v793_v51, %v704_v50 }
  0xb2   : > { %v755_v55 = vpop.f32.mrf.mxu1 }
  0xb3   : > { %v756_v56 = vadd.f32 %v755_v55, %v666_v54  ;;  %v952_v2 = vadd.f32 %v1725_v53, %v794_v59 }
  0xb5   : > { %v937_v58 = vadd.f32 %v1725_v53, %v756_v56 }
  0xb7   : > { %v1404_v60 = vpack.c.bf16 %v937_v58, %v936_v57  ;;  %v706_v61 = vpop.f32.mrf.mxu2 }
  0xb8   : > { %v795_v62 = vpop.f32.mrf.mxu3 }
  0xb9   : > { %1405 = vst [vmem:[%s1733_s8] sm:$0xff] %v1404_v60   ;;  %v796_v63 = vadd.f32 %v795_v62, %v706_v61  ;;  %v669_v0 = vpop.f32.mrf.mxu0 }
  0xba   : > { %v758_v1 = vpop.f32.mrf.mxu1 }
  0xbb   : > { %v953_v3 = vadd.f32 %v1725_v53, %v796_v63  ;;  %v759_v7 = vadd.f32 %v758_v1, %v669_v0 }
  0xbd   : > { %v1444_v4 = vpack.c.bf16 %v953_v3, %v952_v2  ;;  %v938_v11 = vadd.f32 %v1725_v53, %v759_v7 }
  0xbf   : > { %1488 = vst [vmem:[%s1733_s8 + $0x40] sm:$0xff] %v1444_v4   ;;  %v709_v5 = vpop.f32.mrf.mxu2 }
  0xc0   : > { %v798_v6 = vpop.f32.mrf.mxu3 }
  0xc1   : > { %v671_v8 = vpop.f32.mrf.mxu0  ;;  %v799_v13 = vadd.f32 %v798_v6, %v709_v5 }
  0xc2   : > { %v760_v9 = vpop.f32.mrf.mxu1 }
  0xc3   : > { %v761_v10 = vadd.f32 %v760_v9, %v671_v8  ;;  %v954_v20 = vadd.f32 %v1725_v53, %v799_v13 }
  0xc5   : > { %v939_v12 = vadd.f32 %v1725_v53, %v761_v10 }
  0xc7   : > { %v1409_v14 = vpack.c.bf16 %v939_v12, %v938_v11  ;;  %v711_v15 = vpop.f32.mrf.mxu2 }
  0xc8   : > { %v800_v16 = vpop.f32.mrf.mxu3 }
  0xc9   : > { %1481 = vst [vmem:[%s1733_s8 + $0x8] sm:$0xff] %v1409_v14   ;;  %v801_v17 = vadd.f32 %v800_v16, %v711_v15  ;;  %v674_v18 = vpop.f32.mrf.mxu0 }
  0xca   : > { %v763_v19 = vpop.f32.mrf.mxu1 }
  0xcb   : > { %v955_v21 = vadd.f32 %v1725_v53, %v801_v17  ;;  %v764_v25 = vadd.f32 %v763_v19, %v674_v18 }
  0xcd   : > { %v1449_v22 = vpack.c.bf16 %v955_v21, %v954_v20  ;;  %v940_v29 = vadd.f32 %v1725_v53, %v764_v25 }
  0xcf   : > { %1489 = vst [vmem:[%s1733_s8 + $0x48] sm:$0xff] %v1449_v22   ;;  %v714_v23 = vpop.f32.mrf.mxu2 }
  0xd0   : > { %v803_v24 = vpop.f32.mrf.mxu3 }
  0xd1   : > { %v676_v26 = vpop.f32.mrf.mxu0  ;;  %v804_v31 = vadd.f32 %v803_v24, %v714_v23 }
  0xd2   : > { %v765_v27 = vpop.f32.mrf.mxu1 }
  0xd3   : > { %v766_v28 = vadd.f32 %v765_v27, %v676_v26  ;;  %v956_v38 = vadd.f32 %v1725_v53, %v804_v31 }
  0xd5   : > { %v941_v30 = vadd.f32 %v1725_v53, %v766_v28 }
  0xd7   : > { %v1414_v32 = vpack.c.bf16 %v941_v30, %v940_v29  ;;  %v716_v33 = vpop.f32.mrf.mxu2 }
  0xd8   : > { %v805_v34 = vpop.f32.mrf.mxu3 }
  0xd9   : > { %1482 = vst [vmem:[%s1733_s8 + $0x10] sm:$0xff] %v1414_v32   ;;  %v806_v35 = vadd.f32 %v805_v34, %v716_v33  ;;  %v679_v36 = vpop.f32.mrf.mxu0 }
  0xda   : > { %v768_v37 = vpop.f32.mrf.mxu1 }
  0xdb   : > { %v957_v39 = vadd.f32 %v1725_v53, %v806_v35  ;;  %v769_v43 = vadd.f32 %v768_v37, %v679_v36 }
  0xdd   : > { %v1454_v40 = vpack.c.bf16 %v957_v39, %v956_v38  ;;  %v942_v47 = vadd.f32 %v1725_v53, %v769_v43 }
  0xdf   : > { %1490 = vst [vmem:[%s1733_s8 + $0x50] sm:$0xff] %v1454_v40   ;;  %v719_v41 = vpop.f32.mrf.mxu2 }
  0xe0   : > { %v808_v42 = vpop.f32.mrf.mxu3 }
  0xe1   : > { %v681_v44 = vpop.f32.mrf.mxu0  ;;  %v809_v49 = vadd.f32 %v808_v42, %v719_v41 }
  0xe2   : > { %v770_v45 = vpop.f32.mrf.mxu1 }
  0xe3   : > { %v771_v46 = vadd.f32 %v770_v45, %v681_v44  ;;  %v958_v57 = vadd.f32 %v1725_v53, %v809_v49 }
  0xe5   : > { %v943_v48 = vadd.f32 %v1725_v53, %v771_v46 }
  0xe7   : > { %v1419_v50 = vpack.c.bf16 %v943_v48, %v942_v47  ;;  %v721_v51 = vpop.f32.mrf.mxu2 }
  0xe8   : > { %v810_v52 = vpop.f32.mrf.mxu3 }
  0xe9   : > { %1483 = vst [vmem:[%s1733_s8 + $0x18] sm:$0xff] %v1419_v50   ;;  %v811_v54 = vadd.f32 %v810_v52, %v721_v51  ;;  %v684_v55 = vpop.f32.mrf.mxu0 }
  0xea   : > { %v773_v56 = vpop.f32.mrf.mxu1 }
  0xeb   : > { %v959_v58 = vadd.f32 %v1725_v53, %v811_v54  ;;  %v774_v62 = vadd.f32 %v773_v56, %v684_v55 }
  0xed   : > { %v1459_v59 = vpack.c.bf16 %v959_v58, %v958_v57  ;;  %v944_v2 = vadd.f32 %v1725_v53, %v774_v62 }
  0xef   : > { %1491 = vst [vmem:[%s1733_s8 + $0x58] sm:$0xff] %v1459_v59   ;;  %v724_v60 = vpop.f32.mrf.mxu2 }
  0xf0   : > { %v813_v61 = vpop.f32.mrf.mxu3 }
  0xf1   : > { %v686_v63 = vpop.f32.mrf.mxu0  ;;  %v814_v4 = vadd.f32 %v813_v61, %v724_v60 }
  0xf2   : > { %v775_v0 = vpop.f32.mrf.mxu1 }
  0xf3   : > { %v776_v1 = vadd.f32 %v775_v0, %v686_v63  ;;  %v960_v11 = vadd.f32 %v1725_v53, %v814_v4 }
  0xf5   : > { %v945_v3 = vadd.f32 %v1725_v53, %v776_v1 }
  0xf7   : > { %v1424_v5 = vpack.c.bf16 %v945_v3, %v944_v2  ;;  %v726_v6 = vpop.f32.mrf.mxu2 }
  0xf8   : > { %v815_v7 = vpop.f32.mrf.mxu3 }
  0xf9   : > { %1484 = vst [vmem:[%s1733_s8 + $0x20] sm:$0xff] %v1424_v5   ;;  %v816_v8 = vadd.f32 %v815_v7, %v726_v6  ;;  %v689_v9 = vpop.f32.mrf.mxu0 }
  0xfa   : > { %v778_v10 = vpop.f32.mrf.mxu1 }
  0xfb   : > { %v961_v12 = vadd.f32 %v1725_v53, %v816_v8  ;;  %v779_v16 = vadd.f32 %v778_v10, %v689_v9 }
  0xfd   : > { %v1464_v13 = vpack.c.bf16 %v961_v12, %v960_v11  ;;  %v946_v20 = vadd.f32 %v1725_v53, %v779_v16 }
  0xff   : > { %1492 = vst [vmem:[%s1733_s8 + $0x60] sm:$0xff] %v1464_v13   ;;  %v729_v14 = vpop.f32.mrf.mxu2 }
 0x100   : > { %v818_v15 = vpop.f32.mrf.mxu3 }
 0x101   : > { %v691_v17 = vpop.f32.mrf.mxu0  ;;  %v819_v22 = vadd.f32 %v818_v15, %v729_v14 }
 0x102   : > { %v780_v18 = vpop.f32.mrf.mxu1 }
 0x103   : > { %v781_v19 = vadd.f32 %v780_v18, %v691_v17  ;;  %v962_v29 = vadd.f32 %v1725_v53, %v819_v22 }
 0x105   : > { %v947_v21 = vadd.f32 %v1725_v53, %v781_v19 }
 0x107   : > { %v1429_v23 = vpack.c.bf16 %v947_v21, %v946_v20  ;;  %v731_v24 = vpop.f32.mrf.mxu2 }
 0x108   : > { %v820_v25 = vpop.f32.mrf.mxu3 }
 0x109   : > { %1485 = vst [vmem:[%s1733_s8 + $0x28] sm:$0xff] %v1429_v23   ;;  %v821_v26 = vadd.f32 %v820_v25, %v731_v24  ;;  %v694_v27 = vpop.f32.mrf.mxu0 }
 0x10a   : > { %v783_v28 = vpop.f32.mrf.mxu1 }
 0x10b   : > { %v963_v30 = vadd.f32 %v1725_v53, %v821_v26  ;;  %v784_v34 = vadd.f32 %v783_v28, %v694_v27 }
 0x10d   : > { %v1469_v31 = vpack.c.bf16 %v963_v30, %v962_v29  ;;  %v948_v38 = vadd.f32 %v1725_v53, %v784_v34 }
 0x10f   : > { %1493 = vst [vmem:[%s1733_s8 + $0x68] sm:$0xff] %v1469_v31   ;;  %v734_v32 = vpop.f32.mrf.mxu2 }
 0x110   : > { %v823_v33 = vpop.f32.mrf.mxu3 }
 0x111   : > { %v696_v35 = vpop.f32.mrf.mxu0  ;;  %v824_v40 = vadd.f32 %v823_v33, %v734_v32 }
 0x112   : > { %v785_v36 = vpop.f32.mrf.mxu1 }
 0x113   : > { %v786_v37 = vadd.f32 %v785_v36, %v696_v35  ;;  %v964_v47 = vadd.f32 %v1725_v53, %v824_v40 }
 0x115   : > { %v949_v39 = vadd.f32 %v1725_v53, %v786_v37 }
 0x117   : > { %v1434_v41 = vpack.c.bf16 %v949_v39, %v948_v38  ;;  %v736_v42 = vpop.f32.mrf.mxu2 }
 0x118   : > { %v825_v43 = vpop.f32.mrf.mxu3 }
 0x119   : > { %1486 = vst [vmem:[%s1733_s8 + $0x30] sm:$0xff] %v1434_v41   ;;  %v826_v44 = vadd.f32 %v825_v43, %v736_v42  ;;  %v699_v45 = vpop.f32.mrf.mxu0 }
 0x11a   : > { %v788_v46 = vpop.f32.mrf.mxu1 }
 0x11b   : > { %v965_v48 = vadd.f32 %v1725_v53, %v826_v44  ;;  %v789_v52 = vadd.f32 %v788_v46, %v699_v45 }
 0x11d   : > { %v1474_v49 = vpack.c.bf16 %v965_v48, %v964_v47  ;;  %v950_v57 = vadd.f32 %v1725_v53, %v789_v52 }
 0x11f   : > { %1494 = vst [vmem:[%s1733_s8 + $0x70] sm:$0xff] %v1474_v49   ;;  %v739_v50 = vpop.f32.mrf.mxu2 }
 0x120   : > { %v828_v51 = vpop.f32.mrf.mxu3 }
 0x121   : > { %v701_v54 = vpop.f32.mrf.mxu0  ;;  %v829_v59 = vadd.f32 %v828_v51, %v739_v50 }
 0x122   : > { %v790_v55 = vpop.f32.mrf.mxu1 }
 0x123   : > { %v791_v56 = vadd.f32 %v790_v55, %v701_v54  ;;  %v966_v0 = vadd.f32 %v1725_v53, %v829_v59 }
 0x125   : > { %v951_v58 = vadd.f32 %v1725_v53, %v791_v56 }
 0x127   : > { %v1439_v60 = vpack.c.bf16 %v951_v58, %v950_v57  ;;  %v741_v61 = vpop.f32.mrf.mxu2 }
 0x128   : > { %v830_v62 = vpop.f32.mrf.mxu3 }
 0x129   : > { %1487 = vst [vmem:[%s1733_s8 + $0x38] sm:$0xff] %v1439_v60   ;;  %v831_v63 = vadd.f32 %v830_v62, %v741_v61 }
 0x12b   : > { %v967_v1 = vadd.f32 %v1725_v53, %v831_v63 }
 0x12d   : > { %v1479_v2 = vpack.c.bf16 %v967_v1, %v966_v0 }
 0x12f   : > { %1495 = vst [vmem:[%s1733_s8 + $0x78] sm:$0xff] %v1479_v2  }
 0x130 PF: > { %s13_s14 = sadd.s32 1, %s1559_s14   ;;  %s1794_s12 = smov %s1555_s13 }
 0x131   : > { %p10_p5 = scmp.ge.s32.totalorder %s13_s14, 4   ;;  %s1795_s13 = smov %s1797_s15 }
 0x133   :  { %12 = sbr.rel (!%p10_p5) target bundleno = 2 (0x2), region = 76 }

</bundles_post_ra>
